<compile_context>
chip_gen: v7x
topology: tpu7x:2x2x1
jax: 0.10.0
libtpu: 0.0.40
codegen_flags: <defaults>
</compile_context>

<pallas_src>
import functools

import jax
import jax.numpy as jnp
from jax.experimental import pallas as pl
from jax.experimental.pallas import tpu as pltpu

_MiB = 1024 * 1024


# -----------------------------------------------------------------------------
# Kernels
# -----------------------------------------------------------------------------
def _ffw_kernel_resident(x_ref, w1_ref, b1_ref, w2_ref, b2_ref, o_ref):
    """Full weights resident in VMEM; grid = (M_tiles,)."""
    x = x_ref[...].astype(jnp.bfloat16)
    h = jnp.dot(x, w1_ref[...], preferred_element_type=jnp.float32) + b1_ref[...]
    h = jnp.maximum(h, 0.0)
    out = (
        jnp.dot(h.astype(jnp.bfloat16), w2_ref[...],
                preferred_element_type=jnp.float32)
        + b2_ref[...]
    )
    o_ref[...] = out.astype(o_ref.dtype)   # Dropout (eval) == identity


def _ffw_kernel_htiled(x_ref, w1_ref, b1_ref, w2_ref, b2_ref, o_ref, acc_ref):
    """H-reduction path; grid = (M_tiles, H_tiles), H last & 'arbitrary'."""
    hi = pl.program_id(1)

    @pl.when(hi == 0)
    def _init():
        acc_ref[...] = jnp.zeros_like(acc_ref)

    x = x_ref[...].astype(jnp.bfloat16)
    hid = jnp.dot(x, w1_ref[...], preferred_element_type=jnp.float32) + b1_ref[...]
    hid = jnp.maximum(hid, 0.0)
    acc_ref[...] += jnp.dot(hid.astype(jnp.bfloat16), w2_ref[...],
                            preferred_element_type=jnp.float32)

    @pl.when(hi == pl.num_programs(1) - 1)
    def _finalize():
        o_ref[...] = (acc_ref[...] + b2_ref[...]).astype(o_ref.dtype)


# -----------------------------------------------------------------------------
# Tile / VMEM planning (plain Python, runs at trace/plan time)
# -----------------------------------------------------------------------------
def _vmem_capacity_bytes():
    try:
        return int(pltpu.get_tpu_info().vmem_capacity_bytes)
    except Exception:
        return 64 * _MiB  # conservative fallback (v7x per-TC capacity)


def _pick_tile_m(M, requested):
    """Large MXU-friendly row tiles; keep >= 2 grid steps for v7x megacore."""
    tm = requested
    while tm > 256 and pl.cdiv(M, tm) < 2:
        tm //= 2
    if M <= tm:
        # Single tile covering all rows, rounded up to the 8-row sublane multiple.
        return max(8, ((M + 7) // 8) * 8)
    return tm


def _footprint_bytes(C, H, tm, th, out_bytes):
    """Approx per-step VMEM footprint for the chosen tiling."""
    resident = (th == H)
    wbuf = 1 if resident else 2                  # Buffered(1) vs double-buffered
    weights = wbuf * 2 * (C * th) * 2            # bf16 W1 (C,th) + W2 (th,C) tiles
    biases = wbuf * th * 4 + C * 4               # f32 b1 tile + b2
    x_buf = 2 * tm * C * 4                       # double-buffered f32 x tile
    o_buf = 2 * tm * C * out_bytes               # double-buffered out tile
    inter = tm * th * 4 + tm * th * 2            # f32 hidden + bf16 cast temp
    acc = 0 if resident else tm * C * 4          # f32 accumulator scratch
    return weights + biases + x_buf + o_buf + inter + acc


def _pick_tile_h(C, H, tm, out_bytes, budget):
    """Resident weights when they fit; otherwise the largest 128-multiple
    divisor of H whose streamed footprint fits the VMEM budget."""
    if _footprint_bytes(C, H, tm, H, out_bytes) <= budget:
        return H
    cands = [t for t in range(H - 128, 0, -128) if H % t == 0]
    for t in cands:
        if _footprint_bytes(C, H, tm, t, out_bytes) <= budget:
            return t
    # Nothing fits comfortably: take the smallest legal tile (or resident if H
    # has no 128-multiple divisor) and let the compiler do its best.
    return cands[-1] if cands else H


# -----------------------------------------------------------------------------
# pallas_call wrapper
# -----------------------------------------------------------------------------
@functools.partial(jax.jit, static_argnames=("tm", "th", "vmem_limit", "out_dtype"))
def _ffw_impl(x2d, w1_bf, b1, w2_bf, b2, *, tm, th, vmem_limit, out_dtype):
    M, C = x2d.shape
    H = w1_bf.shape[1]
    n_m = pl.cdiv(M, tm)
    n_h = H // th

    out_bytes = jnp.dtype(out_dtype).itemsize
    weight_reads = n_m if n_h > 1 else 1   # streamed weights are re-read per M tile
    cost = pl.CostEstimate(
        flops=4 * M * C * H,               # two matmuls, 2 flops/MAC
        transcendentals=0,
        bytes_accessed=M * C * 4 + M * C * out_bytes + weight_reads * 4 * C * H,
    )

    if n_h == 1:
        # Weights resident (single-buffered); single "parallel" M axis.
        return pl.pallas_call(
            _ffw_kernel_resident,
            out_shape=jax.ShapeDtypeStruct((M, C), out_dtype),
            grid_spec=pltpu.PrefetchScalarGridSpec(
                num_scalar_prefetch=0,
                grid=(n_m,),
                in_specs=[
                    pl.BlockSpec((tm, C), lambda i: (i, 0)),
                    pl.BlockSpec((C, H), lambda i: (0, 0),
                                 pipeline_mode=pl.Buffered(1)),
                    pl.BlockSpec((1, H), lambda i: (0, 0),
                                 pipeline_mode=pl.Buffered(1)),
                    pl.BlockSpec((H, C), lambda i: (0, 0),
                                 pipeline_mode=pl.Buffered(1)),
                    pl.BlockSpec((1, C), lambda i: (0, 0),
                                 pipeline_mode=pl.Buffered(1)),
                ],
                out_specs=pl.BlockSpec((tm, C), lambda i: (i, 0)),
            ),
            compiler_params=pltpu.CompilerParams(
                dimension_semantics=("parallel",),
                vmem_limit_bytes=vmem_limit,
            ),
            cost_estimate=cost,
        )(x2d, w1_bf, b1, w2_bf, b2)

    # H-reduction path: stream weight tiles, accumulate into f32 VMEM scratch.
    return pl.pallas_call(
        _ffw_kernel_htiled,
        out_shape=jax.ShapeDtypeStruct((M, C), out_dtype),
        grid_spec=pltpu.PrefetchScalarGridSpec(
            num_scalar_prefetch=0,
            grid=(n_m, n_h),
            in_specs=[
                pl.BlockSpec((tm, C), lambda i, h: (i, 0)),
                pl.BlockSpec((C, th), lambda i, h: (0, h)),
                pl.BlockSpec((1, th), lambda i, h: (0, h)),
                pl.BlockSpec((th, C), lambda i, h: (h, 0)),
                pl.BlockSpec((1, C), lambda i, h: (0, 0),
                             pipeline_mode=pl.Buffered(1)),
            ],
            out_specs=pl.BlockSpec((tm, C), lambda i, h: (i, 0)),
            scratch_shapes=[pltpu.VMEM((tm, C), jnp.float32)],
        ),
        compiler_params=pltpu.CompilerParams(
            dimension_semantics=("parallel", "arbitrary"),
            vmem_limit_bytes=vmem_limit,
        ),
        cost_estimate=cost,
    )(x2d, w1_bf, b1, w2_bf, b2)


def feed_forward_pallas(x, w1, b1, w2, b2, *, tile_m=512, out_dtype=None):
    """x: (B, T, C). Returns Dropout(Linear2(ReLU(Linear1(x)))) in eval mode."""
    B, T, C = x.shape
    H = w1.shape[1]
    M = B * T
    out_dtype = jnp.dtype(out_dtype if out_dtype is not None else x.dtype)

    x2d = x.reshape(M, C)
    # Weights feed the MXU as bf16 (f32 accumulation inside the kernel);
    # biases stay f32 for the VPU epilogue.
    w1_bf = w1.astype(jnp.bfloat16)
    w2_bf = w2.astype(jnp.bfloat16)

    # Per-generation planning: tile sizes + scoped-VMEM limit from hardware info.
    tm = _pick_tile_m(M, tile_m)
    cap = _vmem_capacity_bytes()
    budget = cap - 16 * _MiB                   # headroom for compiler scratch/sems
    th = _pick_tile_h(C, H, tm, out_dtype.itemsize, budget)
    footprint = _footprint_bytes(C, H, tm, th, out_dtype.itemsize)
    vmem_limit = int(min(max(32 * _MiB, footprint + 8 * _MiB), budget))

    out2d = _ffw_impl(x2d, w1_bf, b1, w2_bf, b2,
                      tm=tm, th=th, vmem_limit=vmem_limit, out_dtype=out_dtype)
    return out2d.reshape(B, T, C)


# -----------------------------------------------------------------------------
# Params / test
# -----------------------------------------------------------------------------
def init_params(key, n_embds):
    """Deterministic parameter init mimicking nn.Linear's U(-1/sqrt(in), 1/sqrt(in))."""
    hidden = n_embds * 4
    k1, k2, k3, k4 = jax.random.split(key, 4)
    bound1 = 1.0 / jnp.sqrt(n_embds)
    bound2 = 1.0 / jnp.sqrt(hidden)
    # stored as (in, out) so the kernel computes x @ W
    w1 = jax.random.uniform(k1, (n_embds, hidden), jnp.float32, -bound1, bound1)
    b1 = jax.random.uniform(k2, (1, hidden), jnp.float32, -bound1, bound1)
    w2 = jax.random.uniform(k3, (hidden, n_embds), jnp.float32, -bound2, bound2)
    b2 = jax.random.uniform(k4, (1, n_embds), jnp.float32, -bound2, bound2)
    return w1, b1, w2, b2


if __name__ == "__main__":
    B, T, n_embds = 2, 8, 32          # small shapes: batch=2, seq=8, n_embds=32
    dropout = 0.1                     # inference mode -> identity

    key = jax.random.PRNGKey(0)
    kx, kp = jax.random.split(key)
    x = jax.random.normal(kx, (B, T, n_embds), jnp.float32)
    w1, b1, w2, b2 = init_params(kp, n_embds)

    out = feed_forward_pallas(x, w1, b1, w2, b2)
    out = jax.block_until_ready(out)
    assert out.shape == (B, T, n_embds)

    # Reference with the same bf16-operand / f32-accumulate numerics.
    x2d = x.reshape(-1, n_embds)
    h_ref = jnp.dot(x2d.astype(jnp.bfloat16), w1.astype(jnp.bfloat16),
                    preferred_element_type=jnp.float32) + b1
    h_ref = jnp.maximum(h_ref, 0.0)
    ref = jnp.dot(h_ref.astype(jnp.bfloat16), w2.astype(jnp.bfloat16),
                  preferred_element_type=jnp.float32) + b2
    ref = ref.reshape(B, T, n_embds)
    assert jnp.allclose(out, ref, atol=1e-4, rtol=1e-4), (
        float(jnp.max(jnp.abs(out - ref))))

    # Coarse sanity check against pure-f32 math (bf16 rounding tolerance).
    ref32 = (jnp.maximum(x2d @ w1 + b1, 0.0) @ w2 + b2).reshape(B, T, n_embds)
    assert jnp.allclose(out, ref32, atol=5e-2, rtol=5e-2)

    print("KERNEL_OK")
</pallas_src>

<mosaic_0001>
module attributes {stable_mosaic.version = 11 : i64} {
  func.func @_ffw_kernel_resident(%arg0: i32, %arg1: memref<16x32xf32, #tpu.memory_space<vmem>>, %arg2: memref<32x128xbf16, #tpu.memory_space<vmem>>, %arg3: memref<1x128xf32, #tpu.memory_space<vmem>>, %arg4: memref<128x32xbf16, #tpu.memory_space<vmem>>, %arg5: memref<1x32xf32, #tpu.memory_space<vmem>>, %arg6: memref<16x32xf32, #tpu.memory_space<vmem>>) attributes {dimension_semantics = [#tpu.dimension_semantics<parallel>], iteration_bounds = array<i64: 1>, scalar_prefetch = 0 : i64, scratch_operands = 0 : i64, tpu.core_type = #tpu.core_type<tc>, window_params = [{transform_indices = @transform_0, window_bounds = array<i64: 16, 32>}, {pipeline_mode = #tpu.pipeline_mode<synchronous>, transform_indices = @transform_1, window_bounds = array<i64: 32, 128>}, {pipeline_mode = #tpu.pipeline_mode<synchronous>, transform_indices = @transform_2, window_bounds = array<i64: 1, 128>}, {pipeline_mode = #tpu.pipeline_mode<synchronous>, transform_indices = @transform_3, window_bounds = array<i64: 128, 32>}, {pipeline_mode = #tpu.pipeline_mode<synchronous>, transform_indices = @transform_4, window_bounds = array<i64: 1, 32>}, {transform_indices = @transform_5, window_bounds = array<i64: 16, 32>}]} {
    %c0 = arith.constant 0 : index
    %c0_0 = arith.constant 0 : index
    %0 = vector.load %arg1[%c0, %c0_0] : memref<16x32xf32, #tpu.memory_space<vmem>>, vector<16x32xf32>
    %1 = arith.truncf %0 : vector<16x32xf32> to vector<16x32xbf16>
    %c0_1 = arith.constant 0 : index
    %c0_2 = arith.constant 0 : index
    %2 = vector.load %arg2[%c0_1, %c0_2] : memref<32x128xbf16, #tpu.memory_space<vmem>>, vector<32x128xbf16>
    %cst = arith.constant dense<0.000000e+00> : vector<16x128xf32>
    %3 = tpu.matmul %1, %2, %cst {dimension_numbers = #tpu.dot_dimension_numbers<[1], [0], [0], [1], [0, 0, 1, 1], [], []>} : vector<16x32xbf16>, vector<32x128xbf16>, vector<16x128xf32> -> vector<16x128xf32>
    %c0_3 = arith.constant 0 : index
    %c0_4 = arith.constant 0 : index
    %4 = vector.load %arg3[%c0_3, %c0_4] : memref<1x128xf32, #tpu.memory_space<vmem>>, vector<1x128xf32>
    %5 = vector.broadcast %4 : vector<1x128xf32> to vector<16x128xf32>
    %6 = arith.addf %3, %5 : vector<16x128xf32>
    %cst_5 = arith.constant 0.000000e+00 : f32
    %7 = vector.broadcast %cst_5 : f32 to vector<16x128xf32>
    %8 = arith.maximumf %6, %7 : vector<16x128xf32>
    %9 = arith.truncf %8 : vector<16x128xf32> to vector<16x128xbf16>
    %c0_6 = arith.constant 0 : index
    %c0_7 = arith.constant 0 : index
    %10 = vector.load %arg4[%c0_6, %c0_7] : memref<128x32xbf16, #tpu.memory_space<vmem>>, vector<128x32xbf16>
    %cst_8 = arith.constant dense<0.000000e+00> : vector<16x32xf32>
    %11 = tpu.matmul %9, %10, %cst_8 {dimension_numbers = #tpu.dot_dimension_numbers<[1], [0], [0], [1], [0, 0, 1, 1], [], []>} : vector<16x128xbf16>, vector<128x32xbf16>, vector<16x32xf32> -> vector<16x32xf32>
    %c0_9 = arith.constant 0 : index
    %c0_10 = arith.constant 0 : index
    %12 = vector.load %arg5[%c0_9, %c0_10] : memref<1x32xf32, #tpu.memory_space<vmem>>, vector<1x32xf32>
    %13 = vector.broadcast %12 : vector<1x32xf32> to vector<16x32xf32>
    %14 = arith.addf %11, %13 : vector<16x32xf32>
    %c0_11 = arith.constant 0 : index
    %c0_12 = arith.constant 0 : index
    %15 = vector.load %arg6[%c0_11, %c0_12] : memref<16x32xf32, #tpu.memory_space<vmem>>, vector<16x32xf32>
    tpu.vector_store %arg6[%c0_11, %c0_12], %14 {strides = array<i32>} : memref<16x32xf32, #tpu.memory_space<vmem>>, vector<16x32xf32>,
    return
  }
  func.func @transform_0(%arg0: i32) -> (i32, i32) {
    %c0_i32 = arith.constant 0 : i32
    %c0_i32_0 = arith.constant 0 : i32
    return %arg0, %c0_i32 : i32, i32
  }
  func.func @transform_1(%arg0: i32) -> (i32, i32) {
    %c0_i32 = arith.constant 0 : i32
    %c0_i32_0 = arith.constant 0 : i32
    %c0_i32_1 = arith.constant 0 : i32
    return %c0_i32, %c0_i32_0 : i32, i32
  }
  func.func @transform_2(%arg0: i32) -> (i32, i32) {
    %c0_i32 = arith.constant 0 : i32
    %c0_i32_0 = arith.constant 0 : i32
    %c0_i32_1 = arith.constant 0 : i32
    return %c0_i32, %c0_i32_0 : i32, i32
  }
  func.func @transform_3(%arg0: i32) -> (i32, i32) {
    %c0_i32 = arith.constant 0 : i32
    %c0_i32_0 = arith.constant 0 : i32
    %c0_i32_1 = arith.constant 0 : i32
    return %c0_i32, %c0_i32_0 : i32, i32
  }
  func.func @transform_4(%arg0: i32) -> (i32, i32) {
    %c0_i32 = arith.constant 0 : i32
    %c0_i32_0 = arith.constant 0 : i32
    %c0_i32_1 = arith.constant 0 : i32
    return %c0_i32, %c0_i32_0 : i32, i32
  }
  func.func @transform_5(%arg0: i32) -> (i32, i32) {
    %c0_i32 = arith.constant 0 : i32
    %c0_i32_0 = arith.constant 0 : i32
    return %arg0, %c0_i32 : i32, i32
  }
}

</mosaic_0001>

<bundles_post_ra>
// kernel: _ffw_impl.1
= control target key start
LH: loop header
LB: loop body
LE: loop exit
PB: predicated region body
PF: predicated region fallthrough
CT: control target
= control target key end

     0   :  { %v318_v1 = vmov 0.0   ;;  %vm319_vm0 = vmmov 0   ;;  %vm48_vm1 = vcmask 261120   ;;  %s410_s0 = inlined_call_operand.vmem [shape: f32[16,32], index: 0, kind: input, shape index: {}]   ;;  %s411_s1 = inlined_call_operand.vmem [shape: bf16[32,128], index: 1, kind: input, shape index: {}]   ;;  %s412_s2 = inlined_call_operand.vmem [shape: f32[1,128], index: 2, kind: input, shape index: {}]   ;;  %s413_s3 = inlined_call_operand.vmem [shape: bf16[128,32], index: 3, kind: input, shape index: {}]   ;;  %s414_s4 = inlined_call_operand.vmem [shape: f32[1,32], index: 4, kind: input, shape index: {}]   ;;  %s415_s5 = inlined_call_operand.hbm [shape: f32[16,32], index: 5, kind: output, shape index: {}]  }
   0x1   :  { %v284_v0 = vld [vmem:[%s411_s1] sm:$0xff]   ;;  %251 = vmatprep.subr.bf16.mxu0 %v318_v1  ;;  %v285_v2 = vld [vmem:[%s411_s1 + $0x8] sm:$0xff]   ;;  %259 = vmatprep.subr.bf16.mxu1 %v318_v1  ;;  %v288_v8 = vld [vmem:[%s413_s3 + $0x10] sm:$0xff]  }
   0x2   :  { %252 = vmatpush3.bf16.msra.mxu0 %v284_v0  ;;  %255 = vmatprep.mubr.msk.bf16.mxu0 %vm319_vm0, %v318_v1  ;;  %v22_v3 = vld [vmem:[%s410_s0] sm:$0xff]  ;;  %v23_v4 = vld [vmem:[%s410_s0 + $0x8] sm:$0xff] }
   0x3   :  { %253 = vmatprep.subr.bf16.mxu0 %v318_v1  ;;  %v286_v5 = vld [vmem:[%s413_s3] sm:$0xff]   ;;  %275 = vmatprep.mubr.msk.bf16.mxu1 %vm319_vm0, %v318_v1  ;;  %v24_v6 = vpack.c.bf16 %v23_v4, %v22_v3  ;;  %v287_v7 = vld [vmem:[%s413_s3 + $0x8] sm:$0xff]  }
   0x4   :  { %260 = vmatpush3.bf16.msra.mxu1 %v286_v5 }
   0x5   :  { %261 = vmatprep.subr.bf16.mxu1 %v318_v1 }
   0x6   :  { %254 = vmatpush3.bf16.msra.mxu0 %v285_v2 }
   0x8   :  { %262 = vmatpush3.bf16.msra.mxu1 %v287_v7 }
   0x9   :  { %256 = vmatmul.mubr.msk.bf16.vlgmr.msra.gmra.mrb[0].mxu0 %vm48_vm1, %v24_v6  ;;  %263 = vmatprep.subr.bf16.mxu1 %v318_v1 }
   0xa   :  { %10 = vsyncpa [#allocation3], 0  ;;  %v289_v9 = vld [vmem:[%s413_s3 + $0x18] sm:$0xff]   ;;  %v290_v10 = vld [vmem:[%s413_s3 + $0x20] sm:$0xff]  }
   0xb   :  { %v291_v11 = vld [vmem:[%s413_s3 + $0x28] sm:$0xff]   ;;  %v292_v12 = vld [vmem:[%s413_s3 + $0x30] sm:$0xff]   ;;  %v293_v13 = vld [vmem:[%s413_s3 + $0x38] sm:$0xff]   ;;  %s320_s3 = smov [#allocation2]  }
   0xc   :  { %264 = vmatpush3.bf16.msra.mxu1 %v288_v8  ;;  %v226_v14 = vld [vmem:[%s412_s2] ss:$0 sm:$0xff]  ;;  %s215_s19 = sshll.u32 %s320_s3, 4  ;;  %s216_s19 = int_to_ptr.vmem [resolvable:$true] %s215_s19 }
   0xd   :  { %265 = vmatprep.subr.bf16.mxu1 %v318_v1  ;;  %v230_v24 = vld [vmem:[%s414_s4] ss:$0 sm:$0xff]  ;;  %s294_s2 = scalar_lea.vmem %s216_s19, 256  ;;  %p299_p1 = scmp.lt.s32.totalorder %s216_s19, %s216_s19 }
   0xe   :  { %p295_p0 = scmp.ne.s32.totalorder %s216_s19, %s294_s2  ;;  %p300_p2 = scmp.lt.s32.totalorder %s294_s2, %s294_s2 }
  0x10   :  { %266 = vmatpush3.bf16.msra.mxu1 %v289_v9  ;;  %p301_p3 = por %p300_p2, %p299_p1 }
  0x11   :  { %267 = vmatprep.subr.bf16.mxu1 %v318_v1 }
  0x12   :  { %p302_p4 = pnand %p301_p3, %p295_p0 }
  0x14   :  { %268 = vmatpush3.bf16.msra.mxu1 %v290_v10 }
  0x15   :  { %269 = vmatprep.subr.bf16.mxu1 %v318_v1 }
  0x18   :  { %270 = vmatpush3.bf16.msra.mxu1 %v291_v11 }
  0x19   :  { %271 = vmatprep.subr.bf16.mxu1 %v318_v1 }
  0x1c   :  { %272 = vmatpush3.bf16.msra.mxu1 %v292_v12 }
  0x1d   :  { %273 = vmatprep.subr.bf16.mxu1 %v318_v1 }
  0x20   :  { %274 = vmatpush3.bf16.msra.mxu1 %v293_v13 }
  0xdc   :  { %v86_v15 = vpop.f32.mrb[0].mxu0 }
  0xdd   :  { %v87_v16 = vadd.f32 %v226_v14, %v86_v15  ;;  %v257_v17 = vpop.f32.mrb[1].mxu0 }
  0xde   :  { %v89_v18 = vpop.f32.mrb[2].mxu0 }
  0xdf   :  { %v90_v19 = vadd.f32 %v226_v14, %v89_v18  ;;  %v258_v20 = vpop.f32.mrb[3].mxu0  ;;  %v93_v21 = vmax.f32 %v87_v16, 0.0 }
  0xe1   :  { %v94_v22 = vmax.f32 %v90_v19, 0.0 }
  0xe3   :  { %v95_v23 = vpack.c.bf16 %v94_v22, %v93_v21 }
  0xe5   :  { %276 = vmatmul.mubr.bf16.vlgmr.msra.gmra.mrb[0].mxu1 %v95_v23 }
 0x1b8   :  { %v201_v25 = vpop.f32.mrb[0].mxu1 }
 0x1b9   :  { %v202_v26 = vadd.f32 %v230_v24, %v201_v25  ;;  %v277_v27 = vpop.f32.mrb[1].mxu1 }
 0x1ba   :  { %v204_v28 = vpop.f32.mrb[2].mxu1 }
 0x1bb   :  { %208 = vst.msk [vmem:[#allocation2] sm:$0xff] %vm48_vm1, %v202_v26  ;;  %v205_v29 = vadd.f32 %v230_v24, %v204_v28  ;;  %v278_v30 = vpop.f32.mrb[3].mxu1 }
 0x1bd   :  { %209 = vst.msk [vmem:[#allocation2 + $0x8] sm:$0xff] %vm48_vm1, %v205_v29 }
 0x1be   :  { %305 = shalt.err (!%p302_p4)
}
 0x1bf   :  { %s306_s21 = scalar_lea.hbm %s415_s5, 256 }
 0x1c0   :  { %p307_p5 = scmp.ne.s32.totalorder %s415_s5, %s306_s21  ;;  %p310_p6 = scmp.lt.u32.totalorder %s306_s21, %s415_s5 }
 0x1c2   :  { %p312_p7 = pnand %p310_p6, %p307_p5 }
 0x1c4   :  { %315 = shalt.err (!%p312_p7)
}
 0x1c5   :  { %s321_s26 = smov 128   ;;  %s322_s27 = smov 8  }
 0x1c6   :  { %221 = dma.vmem_to_hbm [thread:$0]  %s216_s19, 256, %s415_s5, [#allocation3], %s321_s26, %s321_s26, %s322_s27  }
 0x1c7   :  { %316 = dma.done.wait [#allocation3], 256  }
 0x1c8   :  { %317 = vsyncadd [#allocation3], 4294967040 }
 0x1c9   :  { %225 = vsyncpa [#allocation3], 1 }

</bundles_post_ra>
